<compile_context>
chip_gen: v7x
topology: tpu7x:2x2x1
jax: 0.10.0
libtpu: 0.0.40
codegen_flags: <defaults>
</compile_context>

<pallas_src>
import functools
import math

import jax
import jax.numpy as jnp
from jax.experimental import pallas as pl
from jax.experimental.pallas import tpu as pltpu


# ---------------------------------------------------------------------------
# Fused Pallas kernel: full Euler solve of the ConvODEF dynamics in VMEM
# ---------------------------------------------------------------------------
def _node_euler_kernel(z0_ref, w1_ref, tb1_ref, g1_ref, b1_ref,
                       w2_ref, tb2_ref, g2_ref, b2_ref, mask_ref,
                       o_ref, zbuf_ref, hbuf_ref,
                       *, offsets, pad, t0, dt, n_steps, eps):
    # Shapes (channel-major, M = N*H*W):
    #   z0_ref   : (C, M)          initial state
    #   w{1,2}   : (C, 9*C)        conv weights, K index = tap*C + cin
    #   tb{1,2}  : (C, M)          time-channel bias basis (multiply by scalar t)
    #   g,b      : (C, 1)          BatchNorm gamma / beta
    #   mask_ref : (9*C, M)        static in-bounds mask for the 9 taps (zero padding)
    #   o_ref    : (C, M)          z(t1)
    #   zbuf/hbuf: (C, M + 2*pad)  halo-padded flat state / hidden buffers (VMEM scratch)
    C, M = o_ref.shape
    inv_m = 1.0 / float(M)

    # Hoist all weights / constants out of the time loop (loop-invariant values).
    w1 = w1_ref[...]
    tb1 = tb1_ref[...]
    g1 = g1_ref[...]
    b1 = b1_ref[...]
    w2 = w2_ref[...]
    tb2 = tb2_ref[...]
    g2 = g2_ref[...]
    b2 = b2_ref[...]
    mask = mask_ref[...]

    # Zero the halo regions once; interiors are rewritten every step.
    zbuf_ref[...] = jnp.zeros_like(zbuf_ref)
    hbuf_ref[...] = jnp.zeros_like(hbuf_ref)
    zbuf_ref[:, pad:pad + M] = z0_ref[...]

    def im2col(buf_ref):
        # 9 shifted taps via static slices of the VMEM-resident padded buffer;
        # out-of-image reads are zeroed by the static mask (exact 3x3 zero padding).
        taps = [buf_ref[:, pad + off: pad + off + M] for off in offsets]
        return jnp.concatenate(taps, axis=0) * mask          # (9*C, M)

    def conv_relu_bn(buf_ref, w, tb, g, b, t):
        # One K=9*C GEMM per conv layer; time channel folded into t * tb.
        y = jnp.dot(w, im2col(buf_ref),
                    preferred_element_type=jnp.float32) + t * tb   # (C, M)
        y = jnp.maximum(y, 0.0)                               # ReLU (before BN, as in ConvODEF)
        # BatchNorm2d, training mode: one-pass batch stats (biased variance).
        s = jnp.sum(y, axis=1, keepdims=True)
        ss = jnp.sum(y * y, axis=1, keepdims=True)
        mean = s * inv_m
        var = ss * inv_m - mean * mean
        return (y - mean) * jax.lax.rsqrt(var + eps) * g + b

    def step(i, carry):
        t = t0 + dt * i.astype(jnp.float32)
        hbuf_ref[:, pad:pad + M] = conv_relu_bn(zbuf_ref, w1, tb1, g1, b1, t)
        dxdt = conv_relu_bn(hbuf_ref, w2, tb2, g2, b2, t)
        zbuf_ref[:, pad:pad + M] = zbuf_ref[:, pad:pad + M] + dt * dxdt
        return carry

    jax.lax.fori_loop(0, n_steps, step, 0)
    o_ref[...] = zbuf_ref[:, pad:pad + M]


# ---------------------------------------------------------------------------
# Wrapper: NeuralODE.forward (returns z at t[-1]), NCHW in / NCHW out
# ---------------------------------------------------------------------------
def neural_ode_forward(params, z0_nchw, ts=(0.0, 1.0)):
    # TODO(synk): the adjoint backward pass (ODEAdjoint.backward / forward_with_grad)
    # is training-only autograd machinery and is not part of the forward semantics.
    # TODO(synk): at large shapes (e.g. dim=64, 32x32, N=32) the VMEM-resident state
    # would need an M-tiled grid with a two-pass (accumulated) BatchNorm; at the
    # shapes used here everything fits in a single VMEM block.
    N, C, H, W = z0_nchw.shape
    M = N * H * W
    pad = W + 1  # halo so that every tap offset is a valid static slice

    # Static tap geometry (k = dy*3 + dx, same enumeration everywhere).
    offsets = tuple((dy - 1) * W + (dx - 1) for dy in range(3) for dx in range(3))
    yy = jnp.repeat(jnp.arange(H), W)
    xx = jnp.tile(jnp.arange(W), H)
    inb_rows = []
    for dy in range(3):
        for dx in range(3):
            ok = ((yy + (dy - 1) >= 0) & (yy + (dy - 1) < H) &
                  (xx + (dx - 1) >= 0) & (xx + (dx - 1) < W))
            inb_rows.append(jnp.tile(ok, N))                 # tile over batch
    inb = jnp.stack(inb_rows, axis=0).astype(jnp.float32)    # (9, M)
    mask = jnp.repeat(inb, C, axis=0)                        # (9*C, M)

    def split_weight(w):
        # w: (Cout=C, 9, Cin=C+1); last input channel is the time channel.
        w_x = w[:, :, :C].reshape(C, 9 * C)                  # spatial part for the GEMM
        w_t = w[:, :, C]                                     # (C, 9) time-channel taps
        tbias = jnp.dot(w_t, inb)                            # (C, M): conv of the constant
        return w_x, tbias                                    # time plane, per unit t

    w1x, tb1 = split_weight(params["w1"])
    w2x, tb2 = split_weight(params["w2"])
    g1 = params["g1"].reshape(C, 1)
    b1 = params["b1"].reshape(C, 1)
    g2 = params["g2"].reshape(C, 1)
    b2 = params["b2"].reshape(C, 1)

    # NCHW -> channel-major flat (C, M), m = n*H*W + y*W + x (lane-dense layout).
    z_flat = jnp.transpose(z0_nchw, (1, 0, 2, 3)).reshape(C, M)

    vmem = pl.BlockSpec(memory_space=pltpu.MemorySpace.VMEM)
    h_max = 0.05
    for t0, t1 in zip(ts[:-1], ts[1:]):
        n_steps = int(math.ceil(abs(t1 - t0) / h_max))
        dt = (t1 - t0) / n_steps
        kern = functools.partial(
            _node_euler_kernel, offsets=offsets, pad=pad,
            t0=float(t0), dt=float(dt), n_steps=n_steps, eps=1e-5)
        z_flat = pl.pallas_call(
            kern,
            out_shape=jax.ShapeDtypeStruct((C, M), jnp.float32),
            in_specs=[vmem] * 10,
            out_specs=vmem,
            scratch_shapes=[
                pltpu.VMEM((C, M + 2 * pad), jnp.float32),   # padded z buffer
                pltpu.VMEM((C, M + 2 * pad), jnp.float32),   # padded hidden buffer
            ],
        )(z_flat, w1x, tb1, g1, b1, w2x, tb2, g2, b2, mask)

    return jnp.transpose(z_flat.reshape(C, N, H, W), (1, 0, 2, 3))


# ---------------------------------------------------------------------------
# Parameter construction (PyTorch-default-style init)
# ---------------------------------------------------------------------------
def init_params(key, dim):
    cin = dim + 1
    bound = 1.0 / math.sqrt(cin * 9)  # kaiming_uniform(a=sqrt(5)) bound for Conv2d
    k1, k2 = jax.random.split(key)
    # Conv weights stored as (Cout, 9, Cin) with k = dy*3+dx and the time channel last;
    # equivalent to PyTorch (Cout, Cin, 3, 3) up to this fixed relabelling.
    w1 = jax.random.uniform(k1, (dim, 9, cin), jnp.float32, -bound, bound)
    w2 = jax.random.uniform(k2, (dim, 9, cin), jnp.float32, -bound, bound)
    return {
        "w1": w1, "g1": jnp.ones((dim,), jnp.float32), "b1": jnp.zeros((dim,), jnp.float32),
        "w2": w2, "g2": jnp.ones((dim,), jnp.float32), "b2": jnp.zeros((dim,), jnp.float32),
    }


if __name__ == "__main__":
    # Small shapes consistent with the module (ConvODEF(dim), NCHW image input).
    N, C, H, W = 2, 16, 8, 8

    key = jax.random.PRNGKey(0)
    kp, kz = jax.random.split(key)
    params = init_params(kp, C)
    z0 = jax.random.normal(kz, (N, C, H, W), dtype=jnp.float32)

    fwd = jax.jit(lambda p, z: neural_ode_forward(p, z, ts=(0.0, 1.0)))
    out = jax.block_until_ready(fwd(params, z0))

    assert out.shape == (N, C, H, W), out.shape
    assert out.dtype == jnp.float32
    assert bool(jnp.all(jnp.isfinite(out)))
    print("KERNEL_OK")
</pallas_src>

<mosaic_0001>
module attributes {stable_mosaic.version = 11 : i64} {
  func.func @_node_euler_kernel(%arg0: memref<16x128xf32, #tpu.memory_space<vmem>>, %arg1: memref<16x144xf32, #tpu.memory_space<vmem>>, %arg2: memref<16x128xf32, #tpu.memory_space<vmem>>, %arg3: memref<16x1xf32, #tpu.memory_space<vmem>>, %arg4: memref<16x1xf32, #tpu.memory_space<vmem>>, %arg5: memref<16x144xf32, #tpu.memory_space<vmem>>, %arg6: memref<16x128xf32, #tpu.memory_space<vmem>>, %arg7: memref<16x1xf32, #tpu.memory_space<vmem>>, %arg8: memref<16x1xf32, #tpu.memory_space<vmem>>, %arg9: memref<144x128xf32, #tpu.memory_space<vmem>>, %arg10: memref<16x128xf32, #tpu.memory_space<vmem>>, %arg11: memref<16x146xf32, #tpu.memory_space<vmem>>, %arg12: memref<16x146xf32, #tpu.memory_space<vmem>>) attributes {dimension_semantics = [], scalar_prefetch = 0 : i64, scratch_operands = 2 : i64, tpu.core_type = #tpu.core_type<tc>} {
    %c0 = arith.constant 0 : index
    %c0_0 = arith.constant 0 : index
    %0 = vector.load %arg1[%c0, %c0_0] : memref<16x144xf32, #tpu.memory_space<vmem>>, vector<16x144xf32>
    %c0_1 = arith.constant 0 : index
    %c0_2 = arith.constant 0 : index
    %1 = vector.load %arg2[%c0_1, %c0_2] : memref<16x128xf32, #tpu.memory_space<vmem>>, vector<16x128xf32>
    %c0_3 = arith.constant 0 : index
    %c0_4 = arith.constant 0 : index
    %2 = vector.load %arg3[%c0_3, %c0_4] : memref<16x1xf32, #tpu.memory_space<vmem>>, vector<16x1xf32>
    %c0_5 = arith.constant 0 : index
    %c0_6 = arith.constant 0 : index
    %3 = vector.load %arg4[%c0_5, %c0_6] : memref<16x1xf32, #tpu.memory_space<vmem>>, vector<16x1xf32>
    %c0_7 = arith.constant 0 : index
    %c0_8 = arith.constant 0 : index
    %4 = vector.load %arg5[%c0_7, %c0_8] : memref<16x144xf32, #tpu.memory_space<vmem>>, vector<16x144xf32>
    %c0_9 = arith.constant 0 : index
    %c0_10 = arith.constant 0 : index
    %5 = vector.load %arg6[%c0_9, %c0_10] : memref<16x128xf32, #tpu.memory_space<vmem>>, vector<16x128xf32>
    %c0_11 = arith.constant 0 : index
    %c0_12 = arith.constant 0 : index
    %6 = vector.load %arg7[%c0_11, %c0_12] : memref<16x1xf32, #tpu.memory_space<vmem>>, vector<16x1xf32>
    %c0_13 = arith.constant 0 : index
    %c0_14 = arith.constant 0 : index
    %7 = vector.load %arg8[%c0_13, %c0_14] : memref<16x1xf32, #tpu.memory_space<vmem>>, vector<16x1xf32>
    %c0_15 = arith.constant 0 : index
    %c0_16 = arith.constant 0 : index
    %8 = vector.load %arg9[%c0_15, %c0_16] : memref<144x128xf32, #tpu.memory_space<vmem>>, vector<144x128xf32>
    %cst = arith.constant 0.000000e+00 : f32
    %9 = vector.broadcast %cst : f32 to vector<16x146xf32>
    %c0_17 = arith.constant 0 : index
    %c0_18 = arith.constant 0 : index
    %10 = vector.load %arg11[%c0_17, %c0_18] : memref<16x146xf32, #tpu.memory_space<vmem>>, vector<16x146xf32>
    tpu.vector_store %arg11[%c0_17, %c0_18], %9 {strides = array<i32>} : memref<16x146xf32, #tpu.memory_space<vmem>>, vector<16x146xf32>,
    %cst_19 = arith.constant 0.000000e+00 : f32
    %11 = vector.broadcast %cst_19 : f32 to vector<16x146xf32>
    %c0_20 = arith.constant 0 : index
    %c0_21 = arith.constant 0 : index
    %12 = vector.load %arg12[%c0_20, %c0_21] : memref<16x146xf32, #tpu.memory_space<vmem>>, vector<16x146xf32>
    tpu.vector_store %arg12[%c0_20, %c0_21], %11 {strides = array<i32>} : memref<16x146xf32, #tpu.memory_space<vmem>>, vector<16x146xf32>,
    %c0_22 = arith.constant 0 : index
    %c0_23 = arith.constant 0 : index
    %13 = vector.load %arg0[%c0_22, %c0_23] : memref<16x128xf32, #tpu.memory_space<vmem>>, vector<16x128xf32>
    %c0_24 = arith.constant 0 : index
    %c9 = arith.constant 9 : index
    %14 = vector.load %arg11[%c0_24, %c9] : memref<16x146xf32, #tpu.memory_space<vmem>>, vector<16x128xf32>
    tpu.vector_store %arg11[%c0_24, %c9], %13 {strides = array<i32>} : memref<16x146xf32, #tpu.memory_space<vmem>>, vector<16x128xf32>,
    %c0_i32 = arith.constant 0 : i32
    %c20_i32 = arith.constant 20 : i32
    %15 = arith.addi %c0_i32, %c20_i32 : i32
    %c1_i32 = arith.constant 1 : i32
    scf.for %arg13 = %c0_i32 to %15 step %c1_i32  : i32 {
      %18 = arith.sitofp %arg13 : i32 to f32
      %cst_30 = arith.constant 5.000000e-02 : f32
      %19 = arith.mulf %cst_30, %18 : f32
      %cst_31 = arith.constant 0.000000e+00 : f32
      %20 = arith.addf %cst_31, %19 : f32
      %c0_32 = arith.constant 0 : index
      %c0_33 = arith.constant 0 : index
      %21 = vector.load %arg11[%c0_32, %c0_33] : memref<16x146xf32, #tpu.memory_space<vmem>>, vector<16x128xf32>
      %c0_34 = arith.constant 0 : index
      %c1 = arith.constant 1 : index
      %22 = vector.load %arg11[%c0_34, %c1] : memref<16x146xf32, #tpu.memory_space<vmem>>, vector<16x128xf32>
      %c0_35 = arith.constant 0 : index
      %c2 = arith.constant 2 : index
      %23 = vector.load %arg11[%c0_35, %c2] : memref<16x146xf32, #tpu.memory_space<vmem>>, vector<16x128xf32>
      %c0_36 = arith.constant 0 : index
      %c8 = arith.constant 8 : index
      %24 = vector.load %arg11[%c0_36, %c8] : memref<16x146xf32, #tpu.memory_space<vmem>>, vector<16x128xf32>
      %c0_37 = arith.constant 0 : index
      %c9_38 = arith.constant 9 : index
      %25 = vector.load %arg11[%c0_37, %c9_38] : memref<16x146xf32, #tpu.memory_space<vmem>>, vector<16x128xf32>
      %c0_39 = arith.constant 0 : index
      %c10 = arith.constant 10 : index
      %26 = vector.load %arg11[%c0_39, %c10] : memref<16x146xf32, #tpu.memory_space<vmem>>, vector<16x128xf32>
      %c0_40 = arith.constant 0 : index
      %c16 = arith.constant 16 : index
      %27 = vector.load %arg11[%c0_40, %c16] : memref<16x146xf32, #tpu.memory_space<vmem>>, vector<16x128xf32>
      %c0_41 = arith.constant 0 : index
      %c17 = arith.constant 17 : index
      %28 = vector.load %arg11[%c0_41, %c17] : memref<16x146xf32, #tpu.memory_space<vmem>>, vector<16x128xf32>
      %c0_42 = arith.constant 0 : index
      %c18 = arith.constant 18 : index
      %29 = vector.load %arg11[%c0_42, %c18] : memref<16x146xf32, #tpu.memory_space<vmem>>, vector<16x128xf32>
      %30 = tpu.concatenate %21, %22, %23, %24, %25, %26, %27, %28, %29 in 0 : vector<16x128xf32>, vector<16x128xf32>, vector<16x128xf32>, vector<16x128xf32>, vector<16x128xf32>, vector<16x128xf32>, vector<16x128xf32>, vector<16x128xf32>, vector<16x128xf32> -> vector<144x128xf32>
      %31 = arith.mulf %30, %8 : vector<144x128xf32>
      %cst_43 = arith.constant dense<0.000000e+00> : vector<16x128xf32>
      %32 = tpu.matmul %0, %31, %cst_43 {dimension_numbers = #tpu.dot_dimension_numbers<[1], [0], [0], [1], [0, 0, 1, 1], [], []>} : vector<16x144xf32>, vector<144x128xf32>, vector<16x128xf32> -> vector<16x128xf32>
      %33 = vector.broadcast %20 : f32 to vector<16x128xf32>
      %34 = arith.mulf %33, %1 : vector<16x128xf32>
      %35 = arith.addf %32, %34 : vector<16x128xf32>
      %cst_44 = arith.constant 0.000000e+00 : f32
      %36 = vector.broadcast %cst_44 : f32 to vector<16x128xf32>
      %37 = arith.maximumf %35, %36 : vector<16x128xf32>
      %cst_45 = arith.constant dense<0.000000e+00> : vector<16xf32>
      %38 = vector.multi_reduction <add>, %37, %cst_45 [1] : vector<16x128xf32> to vector<16xf32>
      %39 = vector.shape_cast %38 : vector<16xf32> to vector<16x1xf32>
      %40 = arith.mulf %37, %37 : vector<16x128xf32>
      %cst_46 = arith.constant dense<0.000000e+00> : vector<16xf32>
      %41 = vector.multi_reduction <add>, %40, %cst_46 [1] : vector<16x128xf32> to vector<16xf32>
      %42 = vector.shape_cast %41 : vector<16xf32> to vector<16x1xf32>
      %cst_47 = arith.constant 7.812500e-03 : f32
      %43 = vector.broadcast %cst_47 : f32 to vector<16x1xf32>
      %44 = arith.mulf %39, %43 : vector<16x1xf32>
      %cst_48 = arith.constant 7.812500e-03 : f32
      %45 = vector.broadcast %cst_48 : f32 to vector<16x1xf32>
      %46 = arith.mulf %42, %45 : vector<16x1xf32>
      %47 = arith.mulf %44, %44 : vector<16x1xf32>
      %48 = arith.subf %46, %47 : vector<16x1xf32>
      %49 = vector.broadcast %44 : vector<16x1xf32> to vector<16x128xf32>
      %50 = arith.subf %37, %49 : vector<16x128xf32>
      %cst_49 = arith.constant 9.99999974E-6 : f32
      %51 = vector.broadcast %cst_49 : f32 to vector<16x1xf32>
      %52 = arith.addf %48, %51 : vector<16x1xf32>
      %53 = math.rsqrt %52 : vector<16x1xf32>
      %54 = vector.broadcast %53 : vector<16x1xf32> to vector<16x128xf32>
      %55 = arith.mulf %50, %54 : vector<16x128xf32>
      %56 = vector.broadcast %2 : vector<16x1xf32> to vector<16x128xf32>
      %57 = arith.mulf %55, %56 : vector<16x128xf32>
      %58 = vector.broadcast %3 : vector<16x1xf32> to vector<16x128xf32>
      %59 = arith.addf %57, %58 : vector<16x128xf32>
      %c0_50 = arith.constant 0 : index
      %c9_51 = arith.constant 9 : index
      %60 = vector.load %arg12[%c0_50, %c9_51] : memref<16x146xf32, #tpu.memory_space<vmem>>, vector<16x128xf32>
      tpu.vector_store %arg12[%c0_50, %c9_51], %59 {strides = array<i32>} : memref<16x146xf32, #tpu.memory_space<vmem>>, vector<16x128xf32>,
      %c0_52 = arith.constant 0 : index
      %c0_53 = arith.constant 0 : index
      %61 = vector.load %arg12[%c0_52, %c0_53] : memref<16x146xf32, #tpu.memory_space<vmem>>, vector<16x128xf32>
      %c0_54 = arith.constant 0 : index
      %c1_55 = arith.constant 1 : index
      %62 = vector.load %arg12[%c0_54, %c1_55] : memref<16x146xf32, #tpu.memory_space<vmem>>, vector<16x128xf32>
      %c0_56 = arith.constant 0 : index
      %c2_57 = arith.constant 2 : index
      %63 = vector.load %arg12[%c0_56, %c2_57] : memref<16x146xf32, #tpu.memory_space<vmem>>, vector<16x128xf32>
      %c0_58 = arith.constant 0 : index
      %c8_59 = arith.constant 8 : index
      %64 = vector.load %arg12[%c0_58, %c8_59] : memref<16x146xf32, #tpu.memory_space<vmem>>, vector<16x128xf32>
      %c0_60 = arith.constant 0 : index
      %c9_61 = arith.constant 9 : index
      %65 = vector.load %arg12[%c0_60, %c9_61] : memref<16x146xf32, #tpu.memory_space<vmem>>, vector<16x128xf32>
      %c0_62 = arith.constant 0 : index
      %c10_63 = arith.constant 10 : index
      %66 = vector.load %arg12[%c0_62, %c10_63] : memref<16x146xf32, #tpu.memory_space<vmem>>, vector<16x128xf32>
      %c0_64 = arith.constant 0 : index
      %c16_65 = arith.constant 16 : index
      %67 = vector.load %arg12[%c0_64, %c16_65] : memref<16x146xf32, #tpu.memory_space<vmem>>, vector<16x128xf32>
      %c0_66 = arith.constant 0 : index
      %c17_67 = arith.constant 17 : index
      %68 = vector.load %arg12[%c0_66, %c17_67] : memref<16x146xf32, #tpu.memory_space<vmem>>, vector<16x128xf32>
      %c0_68 = arith.constant 0 : index
      %c18_69 = arith.constant 18 : index
      %69 = vector.load %arg12[%c0_68, %c18_69] : memref<16x146xf32, #tpu.memory_space<vmem>>, vector<16x128xf32>
      %70 = tpu.concatenate %61, %62, %63, %64, %65, %66, %67, %68, %69 in 0 : vector<16x128xf32>, vector<16x128xf32>, vector<16x128xf32>, vector<16x128xf32>, vector<16x128xf32>, vector<16x128xf32>, vector<16x128xf32>, vector<16x128xf32>, vector<16x128xf32> -> vector<144x128xf32>
      %71 = arith.mulf %70, %8 : vector<144x128xf32>
      %cst_70 = arith.constant dense<0.000000e+00> : vector<16x128xf32>
      %72 = tpu.matmul %4, %71, %cst_70 {dimension_numbers = #tpu.dot_dimension_numbers<[1], [0], [0], [1], [0, 0, 1, 1], [], []>} : vector<16x144xf32>, vector<144x128xf32>, vector<16x128xf32> -> vector<16x128xf32>
      %73 = vector.broadcast %20 : f32 to vector<16x128xf32>
      %74 = arith.mulf %73, %5 : vector<16x128xf32>
      %75 = arith.addf %72, %74 : vector<16x128xf32>
      %cst_71 = arith.constant 0.000000e+00 : f32
      %76 = vector.broadcast %cst_71 : f32 to vector<16x128xf32>
      %77 = arith.maximumf %75, %76 : vector<16x128xf32>
      %cst_72 = arith.constant dense<0.000000e+00> : vector<16xf32>
      %78 = vector.multi_reduction <add>, %77, %cst_72 [1] : vector<16x128xf32> to vector<16xf32>
      %79 = vector.shape_cast %78 : vector<16xf32> to vector<16x1xf32>
      %80 = arith.mulf %77, %77 : vector<16x128xf32>
      %cst_73 = arith.constant dense<0.000000e+00> : vector<16xf32>
      %81 = vector.multi_reduction <add>, %80, %cst_73 [1] : vector<16x128xf32> to vector<16xf32>
      %82 = vector.shape_cast %81 : vector<16xf32> to vector<16x1xf32>
      %cst_74 = arith.constant 7.812500e-03 : f32
      %83 = vector.broadcast %cst_74 : f32 to vector<16x1xf32>
      %84 = arith.mulf %79, %83 : vector<16x1xf32>
      %cst_75 = arith.constant 7.812500e-03 : f32
      %85 = vector.broadcast %cst_75 : f32 to vector<16x1xf32>
      %86 = arith.mulf %82, %85 : vector<16x1xf32>
      %87 = arith.mulf %84, %84 : vector<16x1xf32>
      %88 = arith.subf %86, %87 : vector<16x1xf32>
      %89 = vector.broadcast %84 : vector<16x1xf32> to vector<16x128xf32>
      %90 = arith.subf %77, %89 : vector<16x128xf32>
      %cst_76 = arith.constant 9.99999974E-6 : f32
      %91 = vector.broadcast %cst_76 : f32 to vector<16x1xf32>
      %92 = arith.addf %88, %91 : vector<16x1xf32>
      %93 = math.rsqrt %92 : vector<16x1xf32>
      %94 = vector.broadcast %93 : vector<16x1xf32> to vector<16x128xf32>
      %95 = arith.mulf %90, %94 : vector<16x128xf32>
      %96 = vector.broadcast %6 : vector<16x1xf32> to vector<16x128xf32>
      %97 = arith.mulf %95, %96 : vector<16x128xf32>
      %98 = vector.broadcast %7 : vector<16x1xf32> to vector<16x128xf32>
      %99 = arith.addf %97, %98 : vector<16x128xf32>
      %c0_77 = arith.constant 0 : index
      %c9_78 = arith.constant 9 : index
      %100 = vector.load %arg11[%c0_77, %c9_78] : memref<16x146xf32, #tpu.memory_space<vmem>>, vector<16x128xf32>
      %cst_79 = arith.constant 5.000000e-02 : f32
      %101 = vector.broadcast %cst_79 : f32 to vector<16x128xf32>
      %102 = arith.mulf %101, %99 : vector<16x128xf32>
      %103 = arith.addf %100, %102 : vector<16x128xf32>
      %c0_80 = arith.constant 0 : index
      %c9_81 = arith.constant 9 : index
      %104 = vector.load %arg11[%c0_80, %c9_81] : memref<16x146xf32, #tpu.memory_space<vmem>>, vector<16x128xf32>
      tpu.vector_store %arg11[%c0_80, %c9_81], %103 {strides = array<i32>} : memref<16x146xf32, #tpu.memory_space<vmem>>, vector<16x128xf32>,
    }
    %c20_i32_25 = arith.constant 20 : i32
    %c0_26 = arith.constant 0 : index
    %c9_27 = arith.constant 9 : index
    %16 = vector.load %arg11[%c0_26, %c9_27] : memref<16x146xf32, #tpu.memory_space<vmem>>, vector<16x128xf32>
    %c0_28 = arith.constant 0 : index
    %c0_29 = arith.constant 0 : index
    %17 = vector.load %arg10[%c0_28, %c0_29] : memref<16x128xf32, #tpu.memory_space<vmem>>, vector<16x128xf32>
    tpu.vector_store %arg10[%c0_28, %c0_29], %16 {strides = array<i32>} : memref<16x128xf32, #tpu.memory_space<vmem>>, vector<16x128xf32>,
    return
  }
}

</mosaic_0001>

<bundles_post_ra>
// kernel: tile.58
= control target key start
LH: loop header
LB: loop body
LE: loop exit
PB: predicated region body
PF: predicated region fallthrough
CT: control target
= control target key end

     0   :  { %v13_v2 = vmov 0   ;;  %s30_s0 = inlined_call_operand.vmem [shape: pred[64], index: 0, kind: input, shape index: {}]   ;;  %s31_s1 = inlined_call_operand.vmem [shape: pred[2,64], index: 1, kind: output, shape index: {}]  }
   0x1   :  { %v4_v0 = vld [vmem:[%s30_s0] ss:$0 sm:$0xff] }
   0x2   :  { %v7_v1 = vand.u32 255, %v4_v0 }
   0x4   :  { %v8_v3 = vpack.c.b16 %v13_v2, %v7_v1 }
   0x6   :  { %v9_v4 = vpack.c.b8 %v13_v2, %v8_v3 }
   0x8   :  { %11 = vst [vmem:[%s31_s1] sm:$0x1] %v9_v4 }

// kernel: tile.91
= control target key start
LH: loop header
LB: loop body
LE: loop exit
PB: predicated region body
PF: predicated region fallthrough
CT: control target
= control target key end

     0   :  { %vm19_vm0 = vcmask 523264   ;;  %vm25_vm1 = vcmask 1048064   ;;  %v39_v6 = vmov 0   ;;  %s56_s0 = inlined_call_operand.vmem [shape: pred[2,64], index: 0, kind: input, shape index: {}]   ;;  %s57_s1 = inlined_call_operand.vmem [shape: pred[1,128], index: 1, kind: output, shape index: {}]  }
   0x1   :  { %v12_v0 = vld [vmem:[%s56_s0] sm:$0x1]  ;;  %s38_s0 = smov 64  }
   0x2   :  { %v13_v1 = vunpack.c.0.s8 %v12_v0 }
   0x4   :  { %17 = vst [vmem:[#allocation1] sm:$0xf] %v13_v1 }
   0xb   :  { %v22_v2 = vld [vmem:[#allocation1 + $0x1] sm:$0x1]   ;;  %v18_v3 = vld [vmem:[#allocation1] sm:$0x1]  }
   0xc   :  { %23 = vrot.lane.b32.xlu0 %v22_v2, %s38_s0  ;;  %20 = vst.msk [vmem:[#allocation0] sm:$0x1] %vm19_vm0, %v18_v3  }
  0x7e   :  { %v24_v4 = vpop.permute.xlu0 %23  }
  0x7f   :  { %26 = vst.msk [vmem:[#allocation0] sm:$0x1] %vm25_vm1, %v24_v4  }
  0x86   :  { %v31_v5 = vld [vmem:[#allocation0] sm:$0xf] }
  0x87   :  { %v33_v7 = vpack.c.b16 %v39_v6, %v31_v5 }
  0x89   :  { %v34_v8 = vpack.c.b8 %v39_v6, %v33_v7 }
  0x8b   :  { %35 = vst [vmem:[%s57_s1] sm:$0x1] %v34_v8 }

// kernel: _lambda_.1
= control target key start
LH: loop header
LB: loop body
LE: loop exit
PB: predicated region body
PF: predicated region fallthrough
CT: control target
= control target key end

     0   :  { %vm74_vm0 = vcmask 146432   ;;  %v795_v2 = vmov 0.0   ;;  %s796_s19 = smov 9   ;;  %vm92_vm1 = vcmask 1047624   ;;  %vm94_vm2 = vcmask 72704   ;;  %s1064_s15 = smov 0   ;;  %s1322_s0 = inlined_call_operand.vmem [shape: f32[16,128], index: 0, kind: input, shape index: {}]   ;;  %s1323_s1 = inlined_call_operand.vmem [shape: f32[16,144], index: 1, kind: input, shape index: {}]   ;;  %s1324_s2 = inlined_call_operand.vmem [shape: f32[16,128], index: 2, kind: input, shape index: {}]   ;;  %s1325_s3 = inlined_call_operand.vmem [shape: f32[16,1], index: 3, kind: input, shape index: {}]   ;;  %s1326_s10 = inlined_call_operand.vmem [shape: f32[16,128], index: 10, kind: output, shape index: {}]   ;;  %s1327_s4 = inlined_call_operand.vmem [shape: f32[16,1], index: 4, kind: input, shape index: {}]   ;;  %s1328_s5 = inlined_call_operand.vmem [shape: f32[16,144], index: 5, kind: input, shape index: {}]   ;;  %s1329_s6 = inlined_call_operand.vmem [shape: f32[16,128], index: 6, kind: input, shape index: {}]   ;;  %s1330_s7 = inlined_call_operand.vmem [shape: f32[16,1], index: 7, kind: input, shape index: {}]   ;;  %s1331_s8 = inlined_call_operand.vmem [shape: f32[16,1], index: 8, kind: input, shape index: {}]   ;;  %s1332_s9 = inlined_call_operand.vmem [shape: f32[144,128], index: 9, kind: input, shape index: {}]  }
   0x1   :  { %v82_v0 = vld [vmem:[%s1322_s0] sm:$0xff]  ;;  %v83_v1 = vld [vmem:[%s1322_s0 + $0x8] sm:$0xff]  ;;  %73 = vst [vmem:[#allocation2] sm:$0xff] %v795_v2  ;;  %75 = vst.msk [vmem:[#allocation2 + $0x8] sm:$0xff] %vm74_vm0, %v795_v2 }
   0x2   :  { %78 = vst [vmem:[#allocation3] sm:$0xff] %v795_v2  ;;  %79 = vst.msk [vmem:[#allocation3 + $0x8] sm:$0xff] %vm74_vm0, %v795_v2  ;;  %v873_v3 = vld [vmem:[%s1323_s1] sm:$0xff]  ;;  %86 = vrot.lane.b32.xlu0 %v82_v0, %s796_s19  ;;  %v878_v4 = vld [vmem:[%s1323_s1 + $0x8] sm:$0xff] }
   0x3   :  { %80 = vst [vmem:[#allocation3 + $0x10] sm:$0xff] %v795_v2  ;;  %81 = vst.msk [vmem:[#allocation3 + $0x18] sm:$0xff] %vm74_vm0, %v795_v2  ;;  %v883_v5 = vld [vmem:[%s1323_s1 + $0x10] sm:$0xff]  ;;  %v888_v6 = vld [vmem:[%s1323_s1 + $0x18] sm:$0xff] }
   0x4   :  { %76 = vst [vmem:[#allocation2 + $0x10] sm:$0xff] %v795_v2  ;;  %77 = vst.msk [vmem:[#allocation2 + $0x18] sm:$0xff] %vm74_vm0, %v795_v2  ;;  %v893_v7 = vld [vmem:[%s1324_s2] sm:$0xff]  ;;  %v898_v8 = vld [vmem:[%s1324_s2 + $0x8] sm:$0xff] }
   0x5   :  { %1335 = vst [vmem:[#allocation4_spill] sm:$0xff] %v873_v3  ;;  %1336 = vst [vmem:[#allocation5_spill] sm:$0xff] %v878_v4  ;;  %v903_v9 = vld [vmem:[%s1325_s3] sm:$0xff]  ;;  %v908_v10 = vld [vmem:[%s1325_s3 + $0x8] sm:$0xff] }
   0x6   :  { %1337 = vst [vmem:[#allocation6_spill] sm:$0xff] %v883_v5  ;;  %1338 = vst [vmem:[#allocation7_spill] sm:$0xff] %v888_v6  ;;  %v913_v11 = vld [vmem:[%s1327_s4] sm:$0xff]  ;;  %v918_v12 = vld [vmem:[%s1327_s4 + $0x8] sm:$0xff]  ;;  %88 = vrot.lane.b32.xlu0 %v83_v1, %s796_s19 }
   0x7   :  { %1339 = vst [vmem:[#allocation8_spill] sm:$0xff] %v893_v7  ;;  %1340 = vst [vmem:[#allocation9_spill] sm:$0xff] %v898_v8  ;;  %v923_v13 = vld [vmem:[%s1328_s5] sm:$0xff]  ;;  %v928_v14 = vld [vmem:[%s1328_s5 + $0x8] sm:$0xff] }
   0x8   :  { %1341 = vst [vmem:[#allocation10_spill] sm:$0xff] %v903_v9  ;;  %1342 = vst [vmem:[#allocation11_spill] sm:$0xff] %v908_v10  ;;  %v933_v15 = vld [vmem:[%s1328_s5 + $0x10] sm:$0xff]  ;;  %v938_v16 = vld [vmem:[%s1328_s5 + $0x18] sm:$0xff] }
   0x9   :  { %1343 = vst [vmem:[#allocation12_spill] sm:$0xff] %v913_v11  ;;  %1344 = vst [vmem:[#allocation13_spill] sm:$0xff] %v918_v12  ;;  %v943_v17 = vld [vmem:[%s1329_s6] sm:$0xff]  ;;  %v948_v18 = vld [vmem:[%s1329_s6 + $0x8] sm:$0xff] }
   0xa   :  { %1345 = vst [vmem:[#allocation14_spill] sm:$0xff] %v928_v14  ;;  %v953_v19 = vld [vmem:[%s1330_s7] sm:$0xff]  ;;  %v958_v20 = vld [vmem:[%s1330_s7 + $0x8] sm:$0xff]  ;;  %v983_v25 = vld [vmem:[%s1332_s9 + $0x10] sm:$0xff] }
   0xb   :  { %v963_v21 = vld [vmem:[%s1331_s8] sm:$0xff]  ;;  %v968_v22 = vld [vmem:[%s1331_s8 + $0x8] sm:$0xff]  ;;  %v988_v26 = vld [vmem:[%s1332_s9 + $0x18] sm:$0xff] }
   0xc   :  { %v973_v23 = vld [vmem:[%s1332_s9] sm:$0xff]  ;;  %v978_v24 = vld [vmem:[%s1332_s9 + $0x8] sm:$0xff]  ;;  %v1003_v29 = vld [vmem:[%s1332_s9 + $0x30] sm:$0xff] }
   0xd   :  { %v993_v27 = vld [vmem:[%s1332_s9 + $0x20] sm:$0xff]  ;;  %v998_v28 = vld [vmem:[%s1332_s9 + $0x28] sm:$0xff]  ;;  %v1008_v30 = vld [vmem:[%s1332_s9 + $0x38] sm:$0xff] }
   0xe   :  { %v1013_v31 = vld [vmem:[%s1332_s9 + $0x40] sm:$0xff]  ;;  %v1018_v32 = vld [vmem:[%s1332_s9 + $0x48] sm:$0xff]  ;;  %v1023_v33 = vld [vmem:[%s1332_s9 + $0x50] sm:$0xff] }
   0xf   :  { %v1028_v34 = vld [vmem:[%s1332_s9 + $0x58] sm:$0xff]  ;;  %v1033_v35 = vld [vmem:[%s1332_s9 + $0x60] sm:$0xff]  ;;  %v1038_v36 = vld [vmem:[%s1332_s9 + $0x68] sm:$0xff] }
  0x10   :  { %v1043_v37 = vld [vmem:[%s1332_s9 + $0x70] sm:$0xff]  ;;  %v1048_v38 = vld [vmem:[%s1332_s9 + $0x78] sm:$0xff]  ;;  %v1053_v39 = vld [vmem:[%s1332_s9 + $0x80] sm:$0xff] }
  0x11   :  { %v1058_v40 = vld [vmem:[%s1332_s9 + $0x88] sm:$0xff] }
  0x74   :  { %v87_v41 = vpop.permute.xlu0 %86 }
  0x75   :  { %93 = vst.msk [vmem:[#allocation2] sm:$0xff] %vm92_vm1, %v87_v41 }
  0x76   :  { %95 = vst.msk [vmem:[#allocation2 + $0x8] sm:$0xff] %vm94_vm2, %v87_v41 }
  0x78   :  { %v89_v42 = vpop.permute.xlu0 %88 }
  0x79   :  { %96 = vst.msk [vmem:[#allocation2 + $0x10] sm:$0xff] %vm92_vm1, %v89_v42 }
  0x7a   :  { %97 = vst.msk [vmem:[#allocation2 + $0x18] sm:$0xff] %vm94_vm2, %v89_v42 }
  0x7b LB: > { %s797_s9 = smov 127   ;;  %v1333_v49 = vmov 0.0|0.0   ;;  %s799_s8 = smov 126   ;;  %vm240_vm3 = vcmask 130048   ;;  %v1346_v4 = vld [vmem:[#allocation5_spill] sm:$0xff]  ;;  %v1347_v14 = vld [vmem:[#allocation14_spill] sm:$0xff]  ;;  %s793_s15 = sphi %s1064_s15, %s103_s15  }
  0x7c   : > { %v1071_v44 = vld [vmem:[#allocation2] sm:$0xff]  ;;  %701 = vmatprep.subr.bf16.mxu0 %v1333_v49  ;;  %728 = vmatprep.subr.bf16.mxu1 %v1333_v49  ;;  %s800_s2 = smov 120   ;;  %s801_s16 = smov 119   ;;  %v806_v51 = vmov 0   ;;  %v1348_v9 = vld [vmem:[#allocation10_spill] sm:$0xff]  ;;  %vm123_vm4 = vcmask 1039360  }
  0x7d   : > { %115 = vrot.lane.b32.xlu0 %v1071_v44, %s797_s9  ;;  %v219_v45 = vmul.f32 %v1071_v44, %v973_v23  ;;  %v1083_v48 = vld [vmem:[#allocation2 + $0x8] sm:$0xff]  ;;  %s802_s17 = smov 118   ;;  %s803_s18 = smov 112   ;;  %697 = vmatprep.mubr.msk.f32.mxu0 %vm240_vm3, %v1346_v4  ;;  %vm136_vm5 = vcmask 1031168   ;;  %vm149_vm6 = vcmask 982016   ;;  %vm162_vm7 = vcmask 973824  }
  0x7e   : > { %s804_s3 = smov 111   ;;  %699 = vmatprep.mubr.msk.f32.mxu1 %vm240_vm3, %v1347_v14  ;;  %s805_s20 = smov 110   ;;  %777 = vset.pattern.permute.xlu1 %v806_v51  ;;  %vm175_vm8 = vcmask 965632   ;;  %vm188_vm9 = vcmask 916480   ;;  %vm201_vm10 = vcmask 908288   ;;  %vm214_vm11 = vcmask 900096  }
  0x7f   : > { %778 = vset.pattern.permute.xlu0 %v806_v51  ;;  %v1349_v3 = vld [vmem:[#allocation4_spill] sm:$0xff]  ;;  %v1350_v6 = vld [vmem:[#allocation7_spill] sm:$0xff]  ;;  %v1351_v5 = vld [vmem:[#allocation6_spill] sm:$0xff]  ;;  %s104_s21 = scvt.s32.f32 %s793_s15  ;;  %s807_s4 = smov 9  }
  0x80   : > { %v1069_v43 = vld [vmem:[#allocation2 + $0x10] sm:$0xff]  ;;  %v1352_v7 = vld [vmem:[#allocation8_spill] sm:$0xff]  ;;  %v1353_v8 = vld [vmem:[#allocation9_spill] sm:$0xff]  ;;  %s103_s15 = sadd.s32 1, %s793_s15  }
  0x81   : > { %119 = vrot.lane.b32.xlu1 %v1069_v43, %s797_s9  ;;  %v220_v46 = vmul.f32 %v1069_v43, %v978_v24  ;;  %v1081_v47 = vld [vmem:[#allocation2 + $0x18] sm:$0xff]  ;;  %117 = vrot.lane.b32.xlu0 %v1083_v48, %s797_s9  ;;  %s105_s0 = smul.f32 0.05, %s104_s21  ;;  %v1354_v11 = vld [vmem:[#allocation12_spill] sm:$0xff]  ;;  %v1355_v12 = vld [vmem:[#allocation13_spill] sm:$0xff]  ;;  %p100_p0 = scmp.ge.s32.totalorder %s103_s15, 20  }
  0x82   : > { %v1356_v10 = vld [vmem:[#allocation11_spill] sm:$0xff]  ;;  %s808_s22 = smov (%p100_p0), 119  }
  0x83   : > { %v702_v50 = vpack.c.bf16 %v220_v46, %v219_v45 }
  0x85   : > { %121 = vrot.lane.b32.xlu1 %v1081_v47, %s797_s9  ;;  %703 = vmatpush1.bf16.msra.mxu0 %v702_v50 }
  0x86   : > { %704 = vmatprep.subr.bf16.mxu0 %v1333_v49  ;;  %128 = vrot.lane.b32.xlu0 %v1071_v44, %s799_s8 }
  0x89   : > { %130 = vrot.lane.b32.xlu1 %v1083_v48, %s799_s8 }
  0x8a   : > { %132 = vrot.lane.b32.xlu0 %v1069_v43, %s799_s8 }
  0x8d   : > { %134 = vrot.lane.b32.xlu1 %v1081_v47, %s799_s8 }
  0x8e   : > { %141 = vrot.lane.b32.xlu0 %v1071_v44, %s800_s2 }
  0x91   : > { %143 = vrot.lane.b32.xlu1 %v1083_v48, %s800_s2 }
  0x92   : > { %145 = vrot.lane.b32.xlu0 %v1069_v43, %s800_s2 }
  0x95   : > { %147 = vrot.lane.b32.xlu1 %v1081_v47, %s800_s2 }
  0x96   : > { %154 = vrot.lane.b32.xlu0 %v1071_v44, %s801_s16 }
  0x99   : > { %156 = vrot.lane.b32.xlu1 %v1083_v48, %s801_s16 }
  0x9a   : > { %158 = vrot.lane.b32.xlu0 %v1069_v43, %s801_s16 }
  0x9d   : > { %160 = vrot.lane.b32.xlu1 %v1081_v47, %s801_s16 }
  0x9e   : > { %167 = vrot.lane.b32.xlu0 %v1071_v44, %s802_s17 }
  0xa1   : > { %169 = vrot.lane.b32.xlu1 %v1083_v48, %s802_s17 }
  0xa2   : > { %171 = vrot.lane.b32.xlu0 %v1069_v43, %s802_s17 }
  0xa5   : > { %173 = vrot.lane.b32.xlu1 %v1081_v47, %s802_s17 }
  0xa6   : > { %180 = vrot.lane.b32.xlu0 %v1071_v44, %s803_s18 }
  0xa9   : > { %182 = vrot.lane.b32.xlu1 %v1083_v48, %s803_s18 }
  0xaa   : > { %184 = vrot.lane.b32.xlu0 %v1069_v43, %s803_s18 }
  0xad   : > { %186 = vrot.lane.b32.xlu1 %v1081_v47, %s803_s18 }
  0xae   : > { %193 = vrot.lane.b32.xlu0 %v1071_v44, %s804_s3 }
  0xb1   : > { %195 = vrot.lane.b32.xlu1 %v1083_v48, %s804_s3 }
  0xb2   : > { %197 = vrot.lane.b32.xlu0 %v1069_v43, %s804_s3 }
  0xb5   : > { %199 = vrot.lane.b32.xlu1 %v1081_v47, %s804_s3 }
  0xb6   : > { %206 = vrot.lane.b32.xlu0 %v1071_v44, %s805_s20 }
  0xb9   : > { %208 = vrot.lane.b32.xlu1 %v1083_v48, %s805_s20 }
  0xba   : > { %210 = vrot.lane.b32.xlu0 %v1069_v43, %s805_s20 }
  0xbd   : > { %212 = vrot.lane.b32.xlu1 %v1081_v47, %s805_s20 }
  0xc1   : > { %352 = vperm.xlu1 %777, %v1348_v9  }
  0xef   : > { %v116_v53 = vpop.permute.xlu0 %115 }
  0xf3   : > { %v120_v52 = vpop.permute.xlu1 %119  ;;  %v118_v55 = vpop.permute.xlu0 %117 }
  0xf4   : > { %v124_v57 = vsel %vm123_vm4, %v116_v53, %v118_v55 }
  0xf5   : > { %v221_v59 = vmul.f32 %v124_v57, %v983_v25 }
  0xf7   : > { %v122_v54 = vpop.permute.xlu1 %121 }
  0xf8   : > { %v125_v56 = vsel %vm123_vm4, %v120_v52, %v122_v54  ;;  %v129_v61 = vpop.permute.xlu0 %128 }
  0xf9   : > { %v222_v58 = vmul.f32 %v125_v56, %v988_v26 }
  0xfb   : > { %v131_v60 = vpop.permute.xlu1 %130  ;;  %v705_v62 = vpack.c.bf16 %v222_v58, %v221_v59 }
  0xfc   : > { %v137_v63 = vsel %vm136_vm5, %v129_v61, %v131_v60  ;;  %v133_v1 = vpop.permute.xlu0 %132 }
  0xfd   : > { %706 = vmatpush1.bf16.msra.mxu0 %v705_v62  ;;  %v223_v41 = vmul.f32 %v137_v63, %v993_v27 }
  0xfe   : > { %707 = vmatprep.subr.bf16.mxu0 %v1333_v49 }
  0xff   : > { %v135_v0 = vpop.permute.xlu1 %134 }
 0x100   : > { %v138_v2 = vsel %vm136_vm5, %v133_v1, %v135_v0  ;;  %v142_v46 = vpop.permute.xlu0 %141 }
 0x101   : > { %v224_v42 = vmul.f32 %v138_v2, %v998_v28 }
 0x103   : > { %v144_v45 = vpop.permute.xlu1 %143  ;;  %v708_v50 = vpack.c.bf16 %v224_v42, %v223_v41 }
 0x104   : > { %v150_v51 = vsel %vm149_vm6, %v142_v46, %v144_v45  ;;  %v146_v53 = vpop.permute.xlu0 %145 }
 0x105   : > { %709 = vmatpush1.bf16.msra.mxu0 %v708_v50  ;;  %v225_v55 = vmul.f32 %v150_v51, %v1003_v29 }
 0x106   : > { %710 = vmatprep.subr.bf16.mxu0 %v1333_v49 }
 0x107   : > { %v148_v52 = vpop.permute.xlu1 %147 }
 0x108   : > { %v151_v54 = vsel %vm149_vm6, %v146_v53, %v148_v52  ;;  %v155_v58 = vpop.permute.xlu0 %154 }
 0x109   : > { %v226_v56 = vmul.f32 %v151_v54, %v1008_v30 }
 0x10b   : > { %v157_v57 = vpop.permute.xlu1 %156  ;;  %v711_v59 = vpack.c.bf16 %v226_v56, %v225_v55 }
 0x10c   : > { %v163_v60 = vsel %vm162_vm7, %v155_v58, %v157_v57  ;;  %v159_v62 = vpop.permute.xlu0 %158 }
 0x10d   : > { %712 = vmatpush1.bf16.msra.mxu0 %v711_v59  ;;  %v227_v0 = vmul.f32 %v163_v60, %v1013_v31 }
 0x10e   : > { %713 = vmatprep.subr.bf16.mxu0 %v1333_v49 }
 0x10f   : > { %v161_v61 = vpop.permute.xlu1 %160 }
 0x110   : > { %v164_v63 = vsel %vm162_vm7, %v159_v62, %v161_v61  ;;  %v168_v41 = vpop.permute.xlu0 %167 }
 0x111   : > { %v228_v1 = vmul.f32 %v164_v63, %v1018_v32 }
 0x113   : > { %v170_v2 = vpop.permute.xlu1 %169  ;;  %v714_v42 = vpack.c.bf16 %v228_v1, %v227_v0 }
 0x114   : > { %v176_v45 = vsel %vm175_vm8, %v168_v41, %v170_v2  ;;  %v172_v50 = vpop.permute.xlu0 %171 }
 0x115   : > { %715 = vmatpush1.bf16.msra.mxu0 %v714_v42  ;;  %v229_v52 = vmul.f32 %v176_v45, %v1023_v33 }
 0x116   : > { %716 = vmatprep.subr.bf16.mxu0 %v1333_v49 }
 0x117   : > { %v174_v46 = vpop.permute.xlu1 %173 }
 0x118   : > { %v177_v51 = vsel %vm175_vm8, %v172_v50, %v174_v46  ;;  %v181_v55 = vpop.permute.xlu0 %180 }
 0x119   : > { %v230_v53 = vmul.f32 %v177_v51, %v1028_v34 }
 0x11b   : > { %v183_v54 = vpop.permute.xlu1 %182  ;;  %v717_v56 = vpack.c.bf16 %v230_v53, %v229_v52 }
 0x11c   : > { %v189_v57 = vsel %vm188_vm9, %v181_v55, %v183_v54  ;;  %v185_v59 = vpop.permute.xlu0 %184 }
 0x11d   : > { %718 = vmatpush1.bf16.msra.mxu0 %v717_v56  ;;  %v231_v61 = vmul.f32 %v189_v57, %v1033_v35 }
 0x11e   : > { %719 = vmatprep.subr.bf16.mxu0 %v1333_v49 }
 0x11f   : > { %v187_v58 = vpop.permute.xlu1 %186 }
 0x120   : > { %v190_v60 = vsel %vm188_vm9, %v185_v59, %v187_v58  ;;  %v194_v0 = vpop.permute.xlu0 %193 }
 0x121   : > { %v232_v62 = vmul.f32 %v190_v60, %v1038_v36 }
 0x123   : > { %v196_v63 = vpop.permute.xlu1 %195  ;;  %v720_v1 = vpack.c.bf16 %v232_v62, %v231_v61  ;;  %v1197_v61 = vstv %s105_s0 }
 0x124   : > { %v202_v2 = vsel %vm201_vm10, %v194_v0, %v196_v63  ;;  %v198_v42 = vpop.permute.xlu0 %197  ;;  %v238_v62 = vmul.f32 %v1197_v61, %v1352_v7 }
 0x125   : > { %721 = vmatpush1.bf16.msra.mxu0 %v720_v1  ;;  %v233_v46 = vmul.f32 %v202_v2, %v1043_v37  ;;  %v239_v2 = vmul.f32 %v1197_v61, %v1353_v8 }
 0x126   : > { %722 = vmatprep.subr.bf16.mxu0 %v1333_v49 }
 0x127   : > { %v200_v41 = vpop.permute.xlu1 %199 }
 0x128   : > { %v203_v45 = vsel %vm201_vm10, %v198_v42, %v200_v41  ;;  %v207_v52 = vpop.permute.xlu0 %206 }
 0x129   : > { %v234_v50 = vmul.f32 %v203_v45, %v1048_v38 }
 0x12b   : > { %v209_v51 = vpop.permute.xlu1 %208  ;;  %v723_v53 = vpack.c.bf16 %v234_v50, %v233_v46 }
 0x12c   : > { %v215_v54 = vsel %vm214_vm11, %v207_v52, %v209_v51  ;;  %v211_v56 = vpop.permute.xlu0 %210 }
 0x12d   : > { %724 = vmatpush1.bf16.msra.mxu0 %v723_v53  ;;  %v235_v58 = vmul.f32 %v215_v54, %v1053_v39 }
 0x12e   : > { %725 = vmatprep.subr.bf16.mxu0 %v1333_v49 }
 0x12f   : > { %v213_v55 = vpop.permute.xlu1 %212 }
 0x130   : > { %v216_v57 = vsel %vm214_vm11, %v211_v56, %v213_v55 }
 0x131   : > { %v236_v59 = vmul.f32 %v216_v57, %v1058_v40 }
 0x133   : > { %v726_v60 = vpack.c.bf16 %v236_v59, %v235_v58 }
 0x135   : > { %727 = vmatpush1.bf16.msra.mxu0 %v726_v60 }
 0x138   : > { %312 = vmatmul.mubr.f32.vlgmr.msra.gmra.mrb[0].mxu0 %v1349_v3 }
 0x139   : > { %698 = vmatprep.mubr.msk.f32.mxu0 %vm240_vm3, %v1350_v6 }
 0x13c   : > { %317 = vmatmul.mubr.f32.gmra.mrb[2].mxu0 %v1351_v5 }
 0x140   : > { %v353_v53 = vpop.permute.xlu1 %352 }
 0x20b   : > { %v313_v63 = vpop.f32.mrb[0].mxu0 }
 0x20c   : > { %v314_v0 = vadd.f32 %v313_v63, %v238_v62  ;;  %v315_v1 = vpop.f32.mrb[1].mxu0 }
 0x20e   : > { %v322_v41 = vmax.f32 %v314_v0, 0.0 }
 0x20f   : > { %v318_v42 = vpop.f32.mrb[2].mxu0 }
 0x210   : > { %v319_v45 = vadd.f32 %v318_v42, %v239_v2  ;;  %324 = vadd.xlane.f32.xlu0 %v322_v41  ;;  %v320_v46 = vpop.f32.mrb[3].mxu0  ;;  %v328_v51 = vmul.f32 %v322_v41, %v322_v41 }
 0x212   : > { %v323_v50 = vmax.f32 %v319_v45, 0.0 }
 0x214   : > { %326 = vadd.xlane.f32.xlu1 %v323_v50  ;;  %330 = vadd.xlane.f32.xlu0 %v328_v51  ;;  %v329_v52 = vmul.f32 %v323_v50, %v323_v50 }
 0x218   : > { %332 = vadd.xlane.f32.xlu0 %v329_v52 }
 0x225   : > { %364 = vperm.xlu1 %777, %v1354_v11  }
 0x229   : > { %369 = vperm.xlu1 %777, %v1355_v12  }
 0x22e   : > { %357 = vperm.xlu0 %778, %v1356_v10  }
 0x29d   : > { %v325_v54 = vpop.xlane.xlu0 %324 }
 0x29e   : > { %v334_v55 = vmul.f32 0.0078125, %v325_v54 }
 0x2a0   : > { %v338_v58 = vmul.f32 %v334_v55, %v334_v55  ;;  %v342_v46 = vsub.f32 %v322_v41, %v334_v55 }
 0x2a1   : > { %v327_v56 = vpop.xlane.xlu1 %326  ;;  %v331_v57 = vpop.xlane.xlu0 %330 }
 0x2a2   : > { %v335_v59 = vmul.f32 0.0078125, %v327_v56  ;;  %v336_v60 = vmul.f32 0.0078125, %v331_v57 }
 0x2a4   : > { %v339_v62 = vmul.f32 %v335_v59, %v335_v59  ;;  %v340_v63 = vsub.f32 %v336_v60, %v338_v58  ;;  %v343_v3 = vsub.f32 %v323_v50, %v335_v59 }
 0x2a5   : > { %v333_v0 = vpop.xlane.xlu0 %332  ;;  %v365_v49 = vpop.permute.xlu1 %364 }
 0x2a6   : > { %v344_v1 = vadd.f32 1e-05, %v340_v63  ;;  %v337_v2 = vmul.f32 0.0078125, %v333_v0 }
 0x2a8   : > { %779 = vrsqrt.f32 %v344_v1  ;;  %v341_v42 = vsub.f32 %v337_v2, %v339_v62 }
 0x2a9   : > { %v370_v58 = vpop.permute.xlu1 %369 }
 0x2aa   : > { %v345_v45 = vadd.f32 1e-05, %v341_v42 }
 0x2ac   : > { %781 = vrsqrt.f32 %v345_v45 }
 0x2ad   : > { %v358_v5 = vpop.permute.xlu0 %357 }
 0x2b2   : > { %v780_v51 = vpop.eup %779 }
 0x2b3   : > { %v348_v52 = vmul.f32 %v780_v51, %v342_v46 }
 0x2b5   : > { %v360_v54 = vmul.f32 %v353_v53, %v348_v52  ;;  %v1357_v53 = vmov 0.0|0.0  }
 0x2b6   : > { %v782_v4 = vpop.eup %781 }
 0x2b7   : > { %v372_v6 = vadd.f32 %v365_v49, %v360_v54  ;;  %v349_v56 = vmul.f32 %v782_v4, %v343_v3 }
 0x2b9   : > { %v361_v57 = vmul.f32 %v358_v5, %v349_v56  ;;  %376 = vrot.lane.b32.xlu1 %v372_v6, %s807_s4 }
 0x2bb   : > { %v373_v60 = vadd.f32 %v370_v58, %v361_v57 }
 0x2bd   : > { %378 = vrot.lane.b32.xlu1 %v373_v60, %s807_s4 }
 0x32b   : > { %v377_v62 = vpop.permute.xlu1 %376 }
 0x32c   : > { %382 = vst.msk [vmem:[#allocation3] sm:$0xff] %vm92_vm1, %v377_v62 }
 0x32d   : > { %383 = vst.msk [vmem:[#allocation3 + $0x8] sm:$0xff] %vm94_vm2, %v377_v62 }
 0x32f   : > { %v379_v41 = vpop.permute.xlu1 %378 }
 0x330   : > { %384 = vst.msk [vmem:[#allocation3 + $0x10] sm:$0xff] %vm92_vm1, %v379_v41 }
 0x331   : > { %385 = vst.msk [vmem:[#allocation3 + $0x18] sm:$0xff] %vm94_vm2, %v379_v41 }
 0x333   : > { %v386_v49 = vld [vmem:[#allocation3] sm:$0xff] }
 0x334   : > { %406 = vrot.lane.b32.xlu0 %v386_v49, %s799_s8  ;;  %394 = vrot.lane.b32.xlu1 %v386_v49, %s797_s9  ;;  %v388_v3 = vld [vmem:[#allocation3 + $0x8] sm:$0xff]  ;;  %v490_v5 = vmul.f32 %v386_v49, %v973_v23 }
 0x337   : > { %v387_v4 = vld [vmem:[#allocation3 + $0x10] sm:$0xff] }
 0x338   : > { %418 = vrot.lane.b32.xlu0 %v386_v49, %s800_s2  ;;  %396 = vrot.lane.b32.xlu1 %v388_v3, %s797_s9  ;;  %v491_v6 = vmul.f32 %v387_v4, %v978_v24  ;;  %v389_v55 = vld [vmem:[#allocation3 + $0x18] sm:$0xff] }
 0x33a   : > { %v729_v50 = vpack.c.bf16 %v491_v6, %v490_v5 }
 0x33c   : > { %430 = vrot.lane.b32.xlu0 %v386_v49, %s801_s16  ;;  %408 = vrot.lane.b32.xlu1 %v388_v3, %s799_s8 }
 0x33d   : > { %730 = vmatpush1.bf16.msra.mxu1 %v729_v50 }
 0x33e   : > { %731 = vmatprep.subr.bf16.mxu1 %v1357_v53 }
 0x340   : > { %442 = vrot.lane.b32.xlu0 %v386_v49, %s802_s17  ;;  %420 = vrot.lane.b32.xlu1 %v388_v3, %s800_s2 }
 0x344   : > { %454 = vrot.lane.b32.xlu0 %v386_v49, %s803_s18  ;;  %432 = vrot.lane.b32.xlu1 %v388_v3, %s801_s16 }
 0x348   : > { %466 = vrot.lane.b32.xlu0 %v386_v49, %s804_s3  ;;  %444 = vrot.lane.b32.xlu1 %v388_v3, %s802_s17 }
 0x34c   : > { %478 = vrot.lane.b32.xlu0 %v386_v49, %s805_s20  ;;  %456 = vrot.lane.b32.xlu1 %v388_v3, %s803_s18 }
 0x350   : > { %468 = vrot.lane.b32.xlu1 %v388_v3, %s804_s3  ;;  %410 = vrot.lane.b32.xlu0 %v387_v4, %s799_s8 }
 0x354   : > { %480 = vrot.lane.b32.xlu1 %v388_v3, %s805_s20  ;;  %422 = vrot.lane.b32.xlu0 %v387_v4, %s800_s2 }
 0x358   : > { %434 = vrot.lane.b32.xlu0 %v387_v4, %s801_s16  ;;  %398 = vrot.lane.b32.xlu1 %v387_v4, %s797_s9 }
 0x35c   : > { %446 = vrot.lane.b32.xlu0 %v387_v4, %s802_s17  ;;  %400 = vrot.lane.b32.xlu1 %v389_v55, %s797_s9 }
 0x360   : > { %458 = vrot.lane.b32.xlu0 %v387_v4, %s803_s18  ;;  %412 = vrot.lane.b32.xlu1 %v389_v55, %s799_s8 }
 0x364   : > { %470 = vrot.lane.b32.xlu0 %v387_v4, %s804_s3  ;;  %424 = vrot.lane.b32.xlu1 %v389_v55, %s800_s2 }
 0x368   : > { %482 = vrot.lane.b32.xlu0 %v387_v4, %s805_s20  ;;  %436 = vrot.lane.b32.xlu1 %v389_v55, %s801_s16 }
 0x36c   : > { %448 = vrot.lane.b32.xlu1 %v389_v55, %s802_s17 }
 0x370   : > { %460 = vrot.lane.b32.xlu1 %v389_v55, %s803_s18 }
 0x374   : > { %472 = vrot.lane.b32.xlu1 %v389_v55, %s804_s3 }
 0x378   : > { %484 = vrot.lane.b32.xlu1 %v389_v55, %s805_s20 }
 0x37c   : > { %621 = vperm.xlu1 %777, %v953_v19  }
 0x3a6   : > { %v395_v59 = vpop.permute.xlu1 %394  ;;  %v407_v63 = vpop.permute.xlu0 %406 }
 0x3aa   : > { %v397_v0 = vpop.permute.xlu1 %396  ;;  %v419_v1 = vpop.permute.xlu0 %418 }
 0x3ab   : > { %v402_v4 = vsel %vm123_vm4, %v395_v59, %v397_v0 }
 0x3ac   : > { %v492_v50 = vmul.f32 %v402_v4, %v983_v25 }
 0x3ae   : > { %v409_v2 = vpop.permute.xlu1 %408  ;;  %v431_v42 = vpop.permute.xlu0 %430 }
 0x3af   : > { %v414_v7 = vsel %vm136_vm5, %v407_v63, %v409_v2 }
 0x3b0   : > { %v494_v12 = vmul.f32 %v414_v7, %v993_v27 }
 0x3b2   : > { %v421_v45 = vpop.permute.xlu1 %420  ;;  %v443_v46 = vpop.permute.xlu0 %442 }
 0x3b3   : > { %v426_v59 = vsel %vm149_vm6, %v419_v1, %v421_v45 }
 0x3b4   : > { %v496_v63 = vmul.f32 %v426_v59, %v1003_v29 }
 0x3b6   : > { %v433_v51 = vpop.permute.xlu1 %432  ;;  %v455_v52 = vpop.permute.xlu0 %454 }
 0x3ba   : > { %v445_v54 = vpop.permute.xlu1 %444  ;;  %v467_v56 = vpop.permute.xlu0 %466 }
 0x3be   : > { %v457_v57 = vpop.permute.xlu1 %456  ;;  %v1248_v58 = vpop.permute.xlu0 %478 }
 0x3c2   : > { %v469_v60 = vpop.permute.xlu1 %468  ;;  %v411_v62 = vpop.permute.xlu0 %410 }
 0x3c6   : > { %v481_v41 = vpop.permute.xlu1 %480  ;;  %v423_v3 = vpop.permute.xlu0 %422 }
 0x3ca   : > { %v399_v49 = vpop.permute.xlu1 %398  ;;  %v435_v8 = vpop.permute.xlu0 %434 }
 0x3ce   : > { %v401_v5 = vpop.permute.xlu1 %400  ;;  %v447_v2 = vpop.permute.xlu0 %446 }
 0x3cf   : > { %v403_v6 = vsel %vm123_vm4, %v399_v49, %v401_v5 }
 0x3d0   : > { %v493_v55 = vmul.f32 %v403_v6, %v988_v26 }
 0x3d2   : > { %v413_v9 = vpop.permute.xlu1 %412  ;;  %v732_v10 = vpack.c.bf16 %v493_v55, %v492_v50  ;;  %v459_v45 = vpop.permute.xlu0 %458 }
 0x3d3   : > { %v415_v11 = vsel %vm136_vm5, %v411_v62, %v413_v9  ;;  %v438_v9 = vsel %vm162_vm7, %v431_v42, %v433_v51 }
 0x3d4   : > { %v495_v14 = vmul.f32 %v415_v11, %v998_v28  ;;  %733 = vmatpush1.bf16.msra.mxu1 %v732_v10  ;;  %v498_v1 = vmul.f32 %v438_v9, %v1013_v31 }
 0x3d5   : > { %734 = vmatprep.subr.bf16.mxu1 %v1357_v53 }
 0x3d6   : > { %v425_v0 = vpop.permute.xlu1 %424  ;;  %v735_v49 = vpack.c.bf16 %v495_v14, %v494_v12  ;;  %v450_v14 = vsel %vm175_vm8, %v443_v46, %v445_v54  ;;  %v471_v59 = vpop.permute.xlu0 %470 }
 0x3d7   : > { %v427_v4 = vsel %vm149_vm6, %v423_v3, %v425_v0  ;;  %v500_v51 = vmul.f32 %v450_v14, %v1023_v33 }
 0x3d8   : > { %v497_v5 = vmul.f32 %v427_v4, %v1008_v30  ;;  %736 = vmatpush1.bf16.msra.mxu1 %v735_v49  ;;  %v474_v49 = vsel %vm201_vm10, %v467_v56, %v469_v60 }
 0x3d9   : > { %737 = vmatprep.subr.bf16.mxu1 %v1357_v53 }
 0x3da   : > { %v437_v7 = vpop.permute.xlu1 %436  ;;  %v738_v10 = vpack.c.bf16 %v497_v5, %v496_v63  ;;  %v486_v5 = vsel %vm214_vm11, %v1248_v58, %v481_v41  ;;  %v483_v9 = vpop.permute.xlu0 %482  ;;  %v508_v58 = vmul.f32 %v1197_v61, %v943_v17 }
 0x3db   : > { %v439_v11 = vsel %vm162_vm7, %v435_v8, %v437_v7  ;;  %v462_v8 = vsel %vm188_vm9, %v455_v52, %v457_v57  ;;  %v504_v57 = vmul.f32 %v474_v49, %v1043_v37  ;;  %v506_v60 = vmul.f32 %v486_v5, %v1053_v39 }
 0x3dc   : > { %v499_v12 = vmul.f32 %v439_v11, %v1018_v32  ;;  %739 = vmatpush1.bf16.msra.mxu1 %v738_v10  ;;  %v502_v54 = vmul.f32 %v462_v8, %v1033_v35 }
 0x3dd   : > { %740 = vmatprep.subr.bf16.mxu1 %v1357_v53 }
 0x3de   : > { %v449_v62 = vpop.permute.xlu1 %448  ;;  %v741_v3 = vpack.c.bf16 %v499_v12, %v498_v1 }
 0x3df   : > { %v451_v42 = vsel %vm175_vm8, %v447_v2, %v449_v62 }
 0x3e0   : > { %v501_v6 = vmul.f32 %v451_v42, %v1028_v34  ;;  %742 = vmatpush1.bf16.msra.mxu1 %v741_v3 }
 0x3e1   : > { %743 = vmatprep.subr.bf16.mxu1 %v1357_v53 }
 0x3e2   : > { %v461_v50 = vpop.permute.xlu1 %460  ;;  %v744_v55 = vpack.c.bf16 %v501_v6, %v500_v51 }
 0x3e3   : > { %v463_v46 = vsel %vm188_vm9, %v459_v45, %v461_v50  ;;  %v509_v45 = vmul.f32 %v1197_v61, %v948_v18 }
 0x3e4   : > { %v503_v0 = vmul.f32 %v463_v46, %v1038_v36  ;;  %745 = vmatpush1.bf16.msra.mxu1 %v744_v55 }
 0x3e5   : > { %746 = vmatprep.subr.bf16.mxu1 %v1357_v53 }
 0x3e6   : > { %v473_v4 = vpop.permute.xlu1 %472  ;;  %v747_v63 = vpack.c.bf16 %v503_v0, %v502_v54 }
 0x3e7   : > { %v475_v52 = vsel %vm201_vm10, %v471_v59, %v473_v4 }
 0x3e8   : > { %v505_v2 = vmul.f32 %v475_v52, %v1048_v38  ;;  %748 = vmatpush1.bf16.msra.mxu1 %v747_v63 }
 0x3e9   : > { %749 = vmatprep.subr.bf16.mxu1 %v1357_v53 }
 0x3ea   : > { %v485_v7 = vpop.permute.xlu1 %484  ;;  %v750_v10 = vpack.c.bf16 %v505_v2, %v504_v57 }
 0x3eb   : > { %v487_v56 = vsel %vm214_vm11, %v483_v9, %v485_v7 }
 0x3ec   : > { %v507_v11 = vmul.f32 %v487_v56, %v1058_v40  ;;  %751 = vmatpush1.bf16.msra.mxu1 %v750_v10 }
 0x3ed   : > { %752 = vmatprep.subr.bf16.mxu1 %v1357_v53 }
 0x3ee   : > { %v753_v1 = vpack.c.bf16 %v507_v11, %v506_v60 }
 0x3f0   : > { %754 = vmatpush1.bf16.msra.mxu1 %v753_v1 }
 0x3f3   : > { %581 = vmatmul.mubr.f32.vlgmr.msra.gmra.mrb[0].mxu1 %v923_v13 }
 0x3f4   : > { %700 = vmatprep.mubr.msk.f32.mxu1 %vm240_vm3, %v938_v16 }
 0x3f7   : > { %586 = vmatmul.mubr.f32.gmra.mrb[2].mxu1 %v933_v15 }
 0x3fb   : > { %v622_v50 = vpop.permute.xlu1 %621 }
 0x4c6   : > { %v582_v41 = vpop.f32.mrb[0].mxu1 }
 0x4c7   : > { %v583_v12 = vadd.f32 %v582_v41, %v508_v58  ;;  %v584_v14 = vpop.f32.mrb[1].mxu1 }
 0x4c9   : > { %v591_v62 = vmax.f32 %v583_v12, 0.0 }
 0x4ca   : > { %v587_v53 = vpop.f32.mrb[2].mxu1 }
 0x4cb   : > { %v588_v3 = vadd.f32 %v587_v53, %v509_v45  ;;  %593 = vadd.xlane.f32.xlu0 %v591_v62  ;;  %v589_v42 = vpop.f32.mrb[3].mxu1  ;;  %v597_v6 = vmul.f32 %v591_v62, %v591_v62 }
 0x4cd   : > { %v592_v51 = vmax.f32 %v588_v3, 0.0 }
 0x4cf   : > { %595 = vadd.xlane.f32.xlu1 %v592_v51  ;;  %599 = vadd.xlane.f32.xlu0 %v597_v6  ;;  %v598_v8 = vmul.f32 %v592_v51, %v592_v51 }
 0x4d3   : > { %601 = vadd.xlane.f32.xlu0 %v598_v8 }
 0x4e0   : > { %633 = vperm.xlu1 %777, %v963_v21  }
 0x4e4   : > { %638 = vperm.xlu1 %777, %v968_v22  }
 0x4e9   : > { %626 = vperm.xlu0 %778, %v958_v20  }
 0x558   : > { %v594_v55 = vpop.xlane.xlu0 %593 }
 0x559   : > { %v603_v61 = vmul.f32 0.0078125, %v594_v55 }
 0x55b   : > { %v607_v59 = vmul.f32 %v603_v61, %v603_v61  ;;  %v611_v7 = vsub.f32 %v591_v62, %v603_v61 }
 0x55c   : > { %v596_v46 = vpop.xlane.xlu1 %595  ;;  %v600_v54 = vpop.xlane.xlu0 %599 }
 0x55d   : > { %v604_v0 = vmul.f32 0.0078125, %v596_v46  ;;  %v605_v49 = vmul.f32 0.0078125, %v600_v54 }
 0x55f   : > { %v608_v4 = vmul.f32 %v604_v0, %v604_v0  ;;  %v609_v63 = vsub.f32 %v605_v49, %v607_v59  ;;  %v612_v11 = vsub.f32 %v592_v51, %v604_v0 }
 0x560   : > { %v602_v52 = vpop.xlane.xlu0 %601  ;;  %v634_v60 = vpop.permute.xlu1 %633 }
 0x561   : > { %v613_v57 = vadd.f32 1e-05, %v609_v63  ;;  %v606_v2 = vmul.f32 0.0078125, %v602_v52 }
 0x563   : > { %783 = vrsqrt.f32 %v613_v57  ;;  %v610_v5 = vsub.f32 %v606_v2, %v608_v4 }
 0x564   : > { %v639_v3 = vpop.permute.xlu1 %638 }
 0x565   : > { %v614_v9 = vadd.f32 1e-05, %v610_v5 }
 0x567   : > { %785 = vrsqrt.f32 %v614_v9 }
 0x568   : > { %v627_v14 = vpop.permute.xlu0 %626 }
 0x56d   : > { %v784_v10 = vpop.eup %783 }
 0x56e   : > { %v617_v56 = vmul.f32 %v784_v10, %v611_v7 }
 0x570   : > { %v629_v1 = vmul.f32 %v622_v50, %v617_v56 }
 0x571   : > { %v786_v58 = vpop.eup %785 }
 0x572   : > { %v641_v41 = vadd.f32 %v634_v60, %v629_v1  ;;  %v618_v12 = vmul.f32 %v786_v58, %v612_v11 }
 0x574   : > { %v647_v45 = vmul.f32 0.05, %v641_v41  ;;  %v630_v53 = vmul.f32 %v627_v14, %v618_v12 }
 0x576   : > { %v642_v42 = vadd.f32 %v639_v3, %v630_v53  ;;  %651 = vrot.lane.b32.xlu0 %v647_v45, %s807_s4 }
 0x578   : > { %v648_v6 = vmul.f32 0.05, %v642_v42 }
 0x57a   : > { %653 = vrot.lane.b32.xlu1 %v648_v6, %s807_s4 }
 0x5e8   : > { %v652_v8 = vpop.permute.xlu0 %651 }
 0x5e9   : > { %v657_v62 = vadd.f32 %v652_v8, %v1071_v44  ;;  %v658_v55 = vadd.f32 %v652_v8, %v1083_v48 }
 0x5eb   : > { %661 = vst.msk [vmem:[#allocation2] sm:$0xff] %vm92_vm1, %v657_v62 }
 0x5ec   : > { %662 = vst.msk [vmem:[#allocation2 + $0x8] sm:$0xff] %vm94_vm2, %v658_v55  ;;  %v654_v51 = vpop.permute.xlu1 %653 }
 0x5ed   : > { %v659_v50 = vadd.f32 %v654_v51, %v1069_v43  ;;  %v660_v61 = vadd.f32 %v654_v51, %v1081_v47 }
 0x5ef   : > { %663 = vst.msk [vmem:[#allocation2 + $0x10] sm:$0xff] %vm92_vm1, %v659_v50  ;;  %102 = sbr.rel (!%p100_p0) target bundleno = 123 (0x7b), region = 67 }
 0x5f0   : > { %664 = vst.msk [vmem:[#allocation2 + $0x18] sm:$0xff] %vm94_vm2, %v660_v61 }
 0x5f2   :  { %v665_v48 = vld [vmem:[#allocation2] sm:$0xff] (%p100_p0) }
 0x5f3   :  { %673 = vrot.lane.b32.xlu0 (%p100_p0), %v665_v48, %s808_s22  ;;  %v666_v54 = vld [vmem:[#allocation2 + $0x8] sm:$0xff] (%p100_p0) }
 0x5f6   :  { %v667_v44 = vld [vmem:[#allocation2 + $0x10] sm:$0xff] }
 0x5f7   :  { %677 = vrot.lane.b32.xlu1 %v667_v44, %s808_s22  ;;  %v668_v46 = vld [vmem:[#allocation2 + $0x18] sm:$0xff]  ;;  %675 = vrot.lane.b32.xlu0 %v666_v54, %s808_s22 }
 0x5fb   :  { %679 = vrot.lane.b32.xlu1 %v668_v46, %s808_s22 }
 0x665   :  { %v674_v47 = vpop.permute.xlu0 %673 }
 0x669   :  { %v678_v43 = vpop.permute.xlu1 %677  ;;  %v676_v0 = vpop.permute.xlu0 %675 }
 0x66a   :  { %v682_v4 = vsel %vm162_vm7, %v674_v47, %v676_v0 }
 0x66b   :  { %686 = vst [vmem:[%s1326_s10] sm:$0xff] %v682_v4 }
 0x66d   :  { %v680_v59 = vpop.permute.xlu1 %679 }
 0x66e   :  { %v683_v49 = vsel %vm162_vm7, %v678_v43, %v680_v59 }
 0x66f   :  { %687 = vst [vmem:[%s1326_s10 + $0x8] sm:$0xff] %v683_v49 }

</bundles_post_ra>
